<compile_context>
chip_gen: v5e
topology: v5e:2x2
jax: 0.10.0
libtpu: 0.0.40
codegen_flags: <defaults>
</compile_context>

<pallas_src>
import jax
import jax.numpy as jnp
from jax.experimental import pallas as pl
from jax.experimental.pallas import tpu as pltpu


def film_kernel(z_ref, w_ref, b_ref, gamma_ref, beta_ref):
    fd = gamma_ref.shape[-1]
    # One fused matmul: (tm, Cd) @ (Cd, 2*Fd) -> (tm, 2*Fd), f32 accumulation.
    acc = jnp.dot(z_ref[...], w_ref[...], preferred_element_type=jnp.float32)
    acc = acc + b_ref[...]
    gamma_ref[...] = acc[:, :fd].astype(gamma_ref.dtype)
    beta_ref[...] = acc[:, fd:].astype(beta_ref.dtype)


def _pick_row_tile(b_pad: int, cd: int, fd: int, itemsize: int,
                   budget_bytes: int = 8 * 1024 * 1024) -> int:
    """Largest tile (<=1024) that divides the padded batch and whose
    double-buffered per-step footprint (z tile + both output tiles) fits the
    VMEM budget.  b_pad is a multiple of 8, so tm=8 always succeeds."""
    for cand in (1024, 512, 256, 128, 64, 32, 16, 8):
        if b_pad % cand:
            continue
        per_step = 2 * cand * cd * itemsize + 2 * 2 * cand * fd * itemsize
        if per_step <= budget_bytes:
            return cand
    return 8


def film_generator(z, wg, bg, wb, bb):
    """z: (B, Cd); wg/wb: (Cd, Fd); bg/bb: (Fd,) or (1, Fd).
    Returns (gamma, beta), each (B, Fd), matching FiLMGenerator.forward."""
    B, Cd = z.shape
    Fd = wg.shape[1]
    N = 2 * Fd
    itemsize = jnp.dtype(z.dtype).itemsize

    # Pack gamma|beta weights/biases side by side (precomputable in practice).
    bg = jnp.asarray(bg).reshape(1, Fd)
    bb = jnp.asarray(bb).reshape(1, Fd)
    w = jnp.concatenate([wg, wb], axis=1)   # (Cd, 2*Fd)
    b = jnp.concatenate([bg, bb], axis=1)   # (1, 2*Fd)

    # Pad the batch up to a sublane multiple so every row tile is (8,·)-legal.
    b_pad = ((B + 7) // 8) * 8
    z_in = z if b_pad == B else jnp.pad(z, ((0, b_pad - B), (0, 0)))

    tm = _pick_row_tile(b_pad, Cd, Fd, itemsize)
    grid = (b_pad // tm,)

    # VMEM: single-buffered W/b + double-buffered z tile + 2 double-buffered
    # output tiles, with headroom.
    vmem_needed = (Cd * N + N) * itemsize \
        + 2 * tm * Cd * itemsize \
        + 2 * 2 * tm * Fd * itemsize
    vmem_limit = min(max(int(vmem_needed * 1.5) + (1 << 20), 4 << 20),
                     100 * 1024 * 1024)

    cost = pl.CostEstimate(
        flops=2 * b_pad * Cd * N,
        transcendentals=0,
        bytes_accessed=(b_pad * Cd + Cd * N + N + 2 * b_pad * Fd) * itemsize,
    )

    gamma, beta = pl.pallas_call(
        film_kernel,
        out_shape=(
            jax.ShapeDtypeStruct((b_pad, Fd), z.dtype),
            jax.ShapeDtypeStruct((b_pad, Fd), z.dtype),
        ),
        grid=grid,
        in_specs=[
            pl.BlockSpec((tm, Cd), lambda i: (i, 0)),           # z row tile
            pl.BlockSpec((Cd, N), lambda i: (0, 0),
                         pipeline_mode=pl.Buffered(1)),         # resident W
            pl.BlockSpec((1, N), lambda i: (0, 0),
                         pipeline_mode=pl.Buffered(1)),         # resident b
        ],
        out_specs=(
            pl.BlockSpec((tm, Fd), lambda i: (i, 0)),           # gamma tile
            pl.BlockSpec((tm, Fd), lambda i: (i, 0)),           # beta tile
        ),
        compiler_params=pltpu.CompilerParams(
            dimension_semantics=("parallel",),
            vmem_limit_bytes=vmem_limit,
        ),
        cost_estimate=cost,
    )(z_in, w, b)

    if b_pad != B:
        gamma = gamma[:B]
        beta = beta[:B]
    return gamma, beta


if __name__ == "__main__":
    # Small shapes consistent with the module's forward.
    batch, conditioning_dim, feature_dim = 8, 32, 64

    key = jax.random.PRNGKey(0)
    k_z, k_wg, k_bg, k_wb, k_bb = jax.random.split(key, 5)

    z = jax.random.normal(k_z, (batch, conditioning_dim), dtype=jnp.float32)

    # Deterministic parameter init (PyTorch Linear weight is (out, in); we
    # store the transpose (in, out) for the kernel).
    bound = 1.0 / (conditioning_dim ** 0.5)
    wg = jax.random.uniform(k_wg, (conditioning_dim, feature_dim),
                            minval=-bound, maxval=bound, dtype=jnp.float32)
    bg = jax.random.uniform(k_bg, (1, feature_dim),
                            minval=-bound, maxval=bound, dtype=jnp.float32)
    wb = jax.random.uniform(k_wb, (conditioning_dim, feature_dim),
                            minval=-bound, maxval=bound, dtype=jnp.float32)
    bb = jax.random.uniform(k_bb, (1, feature_dim),
                            minval=-bound, maxval=bound, dtype=jnp.float32)

    gamma, beta = film_generator(z, wg, bg, wb, bb)
    jax.block_until_ready((gamma, beta))

    # Reference check in plain JAX.
    gamma_ref = z @ wg + bg
    beta_ref = z @ wb + bb
    assert gamma.shape == (batch, feature_dim)
    assert beta.shape == (batch, feature_dim)
    assert jnp.allclose(gamma, gamma_ref, atol=1e-5, rtol=1e-5)
    assert jnp.allclose(beta, beta_ref, atol=1e-5, rtol=1e-5)

    print("KERNEL_OK")
</pallas_src>

<mosaic_0001>
module attributes {stable_mosaic.version = 11 : i64} {
  func.func @film_kernel(%arg0: i32, %arg1: memref<8x32xf32, #tpu.memory_space<vmem>>, %arg2: memref<32x128xf32, #tpu.memory_space<vmem>>, %arg3: memref<1x128xf32, #tpu.memory_space<vmem>>, %arg4: memref<8x64xf32, #tpu.memory_space<vmem>>, %arg5: memref<8x64xf32, #tpu.memory_space<vmem>>) attributes {dimension_semantics = [#tpu.dimension_semantics<parallel>], iteration_bounds = array<i64: 1>, scalar_prefetch = 0 : i64, scratch_operands = 0 : i64, tpu.core_type = #tpu.core_type<tc>, window_params = [{transform_indices = @transform_0, window_bounds = array<i64: 8, 32>}, {pipeline_mode = #tpu.pipeline_mode<synchronous>, transform_indices = @transform_1, window_bounds = array<i64: 32, 128>}, {pipeline_mode = #tpu.pipeline_mode<synchronous>, transform_indices = @transform_2, window_bounds = array<i64: 1, 128>}, {transform_indices = @transform_3, window_bounds = array<i64: 8, 64>}, {transform_indices = @transform_4, window_bounds = array<i64: 8, 64>}]} {
    %c0 = arith.constant 0 : index
    %c0_0 = arith.constant 0 : index
    %0 = vector.load %arg1[%c0, %c0_0] : memref<8x32xf32, #tpu.memory_space<vmem>>, vector<8x32xf32>
    %c0_1 = arith.constant 0 : index
    %c0_2 = arith.constant 0 : index
    %1 = vector.load %arg2[%c0_1, %c0_2] : memref<32x128xf32, #tpu.memory_space<vmem>>, vector<32x128xf32>
    %cst = arith.constant dense<0.000000e+00> : vector<8x128xf32>
    %2 = tpu.matmul %0, %1, %cst {dimension_numbers = #tpu.dot_dimension_numbers<[1], [0], [0], [1], [0, 0, 1, 1], [], []>} : vector<8x32xf32>, vector<32x128xf32>, vector<8x128xf32> -> vector<8x128xf32>
    %c0_3 = arith.constant 0 : index
    %c0_4 = arith.constant 0 : index
    %3 = vector.load %arg3[%c0_3, %c0_4] : memref<1x128xf32, #tpu.memory_space<vmem>>, vector<1x128xf32>
    %4 = vector.broadcast %3 : vector<1x128xf32> to vector<8x128xf32>
    %5 = arith.addf %2, %4 : vector<8x128xf32>
    %6 = vector.extract_strided_slice %5 {offsets = [0, 0], sizes = [8, 64], strides = [1, 1]} : vector<8x128xf32> to vector<8x64xf32>
    %c0_5 = arith.constant 0 : index
    %c0_6 = arith.constant 0 : index
    %7 = vector.load %arg4[%c0_5, %c0_6] : memref<8x64xf32, #tpu.memory_space<vmem>>, vector<8x64xf32>
    tpu.vector_store %arg4[%c0_5, %c0_6], %6 {strides = array<i32>} : memref<8x64xf32, #tpu.memory_space<vmem>>, vector<8x64xf32>,
    %8 = vector.extract_strided_slice %5 {offsets = [0, 64], sizes = [8, 64], strides = [1, 1]} : vector<8x128xf32> to vector<8x64xf32>
    %c0_7 = arith.constant 0 : index
    %c0_8 = arith.constant 0 : index
    %9 = vector.load %arg5[%c0_7, %c0_8] : memref<8x64xf32, #tpu.memory_space<vmem>>, vector<8x64xf32>
    tpu.vector_store %arg5[%c0_7, %c0_8], %8 {strides = array<i32>} : memref<8x64xf32, #tpu.memory_space<vmem>>, vector<8x64xf32>,
    return
  }
  func.func @transform_0(%arg0: i32) -> (i32, i32) {
    %c0_i32 = arith.constant 0 : i32
    %c0_i32_0 = arith.constant 0 : i32
    return %arg0, %c0_i32 : i32, i32
  }
  func.func @transform_1(%arg0: i32) -> (i32, i32) {
    %c0_i32 = arith.constant 0 : i32
    %c0_i32_0 = arith.constant 0 : i32
    %c0_i32_1 = arith.constant 0 : i32
    return %c0_i32, %c0_i32_0 : i32, i32
  }
  func.func @transform_2(%arg0: i32) -> (i32, i32) {
    %c0_i32 = arith.constant 0 : i32
    %c0_i32_0 = arith.constant 0 : i32
    %c0_i32_1 = arith.constant 0 : i32
    return %c0_i32, %c0_i32_0 : i32, i32
  }
  func.func @transform_3(%arg0: i32) -> (i32, i32) {
    %c0_i32 = arith.constant 0 : i32
    %c0_i32_0 = arith.constant 0 : i32
    return %arg0, %c0_i32 : i32, i32
  }
  func.func @transform_4(%arg0: i32) -> (i32, i32) {
    %c0_i32 = arith.constant 0 : i32
    %c0_i32_0 = arith.constant 0 : i32
    return %arg0, %c0_i32 : i32, i32
  }
}

</mosaic_0001>

<bundles_post_ra>
// kernel: tpu_custom_call.1
= control target key start
LH: loop header
LB: loop body
LE: loop exit
PB: predicated region body
PF: predicated region fallthrough
CT: control target
= control target key end

     0   :  { %10 = vsyncpa [#allocation3], 0  ;;  %s282_s0 = inlined_call_operand.hbm [shape: f32[8,32], index: 0, kind: input, shape index: {}]   ;;  %s283_s1 = inlined_call_operand.hbm [shape: f32[32,128], index: 1, kind: input, shape index: {}]   ;;  %s284_s2 = inlined_call_operand.vmem [shape: f32[1,128], index: 2, kind: input, shape index: {}]   ;;  %s285_s3 = inlined_call_operand.hbm [shape: f32[8,64], index: 3, kind: output, shape index: {0}]   ;;  %s286_s4 = inlined_call_operand.hbm [shape: f32[8,64], index: 4, kind: output, shape index: {1}]  }
   0x1   :  { %11 = vsyncpa [#allocation6], 0 }
   0x2   :  { %12 = vsyncpa [#allocation4], 0 }
   0x3   :  { %13 = vsyncpa [#allocation9], 0  ;;  %s19_s17 = sshll.u32 %s282_s0, 4  ;;  %s235_s18 = smov [#allocation2]   ;;  %s20_s17 = int_to_ptr.hbm [resolvable:$true] %s19_s17 }
   0x4   :  { %s21_s19 = sshll.u32 %s235_s18, 4  ;;  %s29_s22 = sshll.u32 %s283_s1, 4  ;;  %s22_s19 = int_to_ptr.vmem [resolvable:$true] %s21_s19  ;;  %s30_s22 = int_to_ptr.hbm [resolvable:$true] %s29_s22 }
   0x5   :  { %24 = dma.hbm_to_vmem [thread:$0]  %s20_s17, 128, %s22_s19, [#allocation3]  }
   0x6   :  { %s236_s23 = smov [#allocation5]   ;;  %s237_s25 = smov 128  }
   0x7   :  { %s31_s24 = sshll.u32 %s236_s23, 4  ;;  %s238_s26 = smov 8   ;;  %s32_s24 = int_to_ptr.vmem [resolvable:$true] %s31_s24 }
   0x8   :  { %37 = dma.hbm_to_vmem [thread:$0]  %s30_s22, 512, %s32_s24, [#allocation6], %s237_s25, %s237_s25, %s238_s26  }
   0x9   :  { %227 = dma.done.wait [#allocation3], 128  }
   0xa   :  { %228 = vsyncadd [#allocation3], 4294967168 }
   0xb   :  { %229 = dma.done.wait [#allocation6], 512  }
   0xc   :  { %230 = vsyncadd [#allocation6], 4294966784  ;;  %v52_v0 = vld [vmem:[#allocation5 + $0x18] sm:$0xff]  ;;  %v51_v1 = vld [vmem:[#allocation5 + $0x10] sm:$0xff]  ;;  %vm57_vm0 = vcmask 261120   ;;  %s239_s27 = smov [#allocation7]  }
   0xd   :  { %73 = vmatpush.msra.mxu0 %v52_v0  ;;  %v50_v2 = vld [vmem:[#allocation5 + $0x8] sm:$0xff]  ;;  %v49_v3 = vld [vmem:[#allocation5] sm:$0xff]  ;;  %v48_v4 = vld [vmem:[#allocation2] sm:$0xff]  ;;  %s93_s28 = sshll.u32 %s239_s27, 4  ;;  %s95_s5 = sshll.u32 %s285_s3, 4  ;;  %vm81_vm1 = vcmask 523264   ;;  %s94_s28 = int_to_ptr.vmem [resolvable:$true] %s93_s28  ;;  %s96_s5 = int_to_ptr.hbm [resolvable:$true] %s95_s5 }
   0xe   :  { %v130_v5 = vld [vmem:[%s284_s2] ss:$0 sm:$0xff]  ;;  %s240_s6 = smov 64   ;;  %s241_s7 = smov [#allocation8]  }
   0xf   :  { %74 = vmatpush.msra.mxu0 %v51_v1  ;;  %s104_s8 = sshll.u32 %s241_s7, 4  ;;  %s106_s2 = sshll.u32 %s286_s4, 4  ;;  %s105_s8 = int_to_ptr.vmem [resolvable:$true] %s104_s8  ;;  %s107_s2 = int_to_ptr.hbm [resolvable:$true] %s106_s2 }
  0x11   :  { %75 = vmatpush.msra.mxu0 %v50_v2 }
  0x13   :  { %76 = vmatpush.msra.mxu0 %v49_v3 }
  0x14   :  { %122 = vmatmul.msk.f32.vlgmr.msra.gmra.mxu0 %vm57_vm0, %v48_v4 }
  0x91   :  { %v78_v6 = vpop.f32.mrf.mxu0 }
  0x92   :  { %v79_v7 = vadd.f32 %v130_v5, %v78_v6 }
  0x94   :  { %84 = vrot.lane.b32.xlu0 %v79_v7, %s240_s6  ;;  %82 = vst.msk [vmem:[#allocation7] sm:$0xff] %vm81_vm1, %v79_v7 }
  0x95   :  { %98 = dma.vmem_to_hbm [thread:$0]  %s94_s28, 128, %s96_s5, [#allocation4]  }
 0x106   :  { %v85_v8 = vpop.permute.xlu0 %84 }
 0x107   :  { %87 = vst.msk [vmem:[#allocation8] sm:$0xff] %vm81_vm1, %v85_v8 }
 0x108   :  { %109 = dma.vmem_to_hbm [thread:$0]  %s105_s8, 128, %s107_s2, [#allocation9]  }
 0x109   :  { %231 = dma.done.wait [#allocation4], 128  }
 0x10a   :  { %232 = vsyncadd [#allocation4], 4294967168 }
 0x10b   :  { %233 = dma.done.wait [#allocation9], 128  }
 0x10c   :  { %234 = vsyncadd [#allocation9], 4294967168 }
 0x10d   :  { %118 = vsyncpa [#allocation3], 1 }
 0x10e   :  { %119 = vsyncpa [#allocation6], 1 }
 0x10f   :  { %120 = vsyncpa [#allocation4], 1 }
 0x110   :  { %121 = vsyncpa [#allocation9], 1 }

</bundles_post_ra>
